<compile_context>
chip_gen: v6e
topology: v6e:2x2x1
jax: 0.10.0
libtpu: 0.0.40
codegen_flags: <defaults>
</compile_context>

<pallas_src>
import functools

import jax
import jax.numpy as jnp
from jax.experimental import pallas as pl
from jax.experimental.pallas import tpu as pltpu

_LANE = 128      # vreg lane width
_SUBLANE = 16    # row-tile rounding for small tiles (covers f32's 8, bf16's 16)
_MXU_M = 256     # MXU M granularity on v6e/v7x (multiple of v5e's 128)


def _round_up(x, m):
    return ((x + m - 1) // m) * m


def _round_down(x, m):
    return (x // m) * m


def _lid_ffn_kernel(x_ref,
                    w_in_ref, b_in_ref,
                    w_h0_ref, b_h0_ref,
                    w_h1_ref, b_h1_ref,
                    w_bi_ref, b_bi_ref,
                    w_bo_ref, b_bo_ref,
                    w_last_ref, b_last_ref,
                    logits_ref, bneck_ref):
    """One row-tile of the LID feed-forward stack.

    hidden     = relu(x @ W_in + b_in)
    hidden     = relu(hidden @ W_h0 + b_h0)
    hidden     = relu(hidden @ W_h1 + b_h1)
    bottleneck = relu(hidden @ W_bi + b_bi)
    hidden2    = relu(bottleneck @ W_bo + b_bo)     # dropout p=0.0 -> identity
    logits     = hidden2 @ W_last + b_last
    """
    def dense(h_bf16, w_ref, b_ref, relu=True):
        # bf16 x bf16 matmul on the MXU, f32 accumulation; bias/ReLU in f32.
        acc = jnp.dot(h_bf16, w_ref[...], preferred_element_type=jnp.float32)
        acc = acc + b_ref[...]
        return jnp.maximum(acc, 0.0) if relu else acc

    # bf16 cast of the activations happens here (not in the wrapper), so no
    # second padded/cast copy of x is ever materialized in HBM.
    x_bf16 = x_ref[...].astype(jnp.bfloat16)
    h = dense(x_bf16, w_in_ref, b_in_ref).astype(jnp.bfloat16)
    h = dense(h, w_h0_ref, b_h0_ref).astype(jnp.bfloat16)
    h = dense(h, w_h1_ref, b_h1_ref).astype(jnp.bfloat16)

    bn = dense(h, w_bi_ref, b_bi_ref)                       # f32 bottleneck
    bneck_ref[...] = bn.astype(bneck_ref.dtype)

    h2 = dense(bn.astype(jnp.bfloat16), w_bo_ref, b_bo_ref).astype(jnp.bfloat16)
    logits_ref[...] = dense(h2, w_last_ref, b_last_ref, relu=False).astype(
        logits_ref.dtype)


def _vmem_capacity_bytes():
    """Per-TensorCore VMEM capacity; conservative fallback if unavailable."""
    try:
        cap = getattr(pltpu.get_tpu_info(), "vmem_capacity_bytes", None)
        if cap:
            return min(int(cap), 128 << 20)
    except Exception:
        pass
    return 64 << 20   # v7x per-TensorCore VMEM (the smallest current part)


def lid_feed_forward(x, params, *, row_tile=None, single_buffer_weights=True,
                     vmem_budget_bytes=None, vmem_limit_bytes=None):
    """x: [len, bsz, input_size].  params: unpadded f32 Linear weights/biases.

    Returns (logits [len, bsz, output_size], bottleneck [len, bsz, bottleneck]).
    """
    seq_len, bsz, input_size = x.shape
    R = seq_len * bsz

    (w_in, b_in, w_h0, b_h0, w_h1, b_h1,
     w_bi, b_bi, w_bo, b_bo, w_last, b_last) = params

    hidden_size = w_in.shape[1]
    bottleneck_size = w_bi.shape[1]
    output_size = w_last.shape[1]

    in_pad = _round_up(input_size, _LANE)    # for VMEM accounting only
    hid_pad = _round_up(hidden_size, _LANE)
    bn_pad = _round_up(bottleneck_size, _LANE)
    out_pad = _round_up(output_size, _LANE)

    # ---- one-time weight prep: zero-pad feature dims to 128, cast to bf16 ----
    # The first matmul's K dim is left at input_size so x can stream in raw;
    # Mosaic pads a non-128 K internally.
    def pw(w, rpad, cpad):
        return jnp.pad(w, ((0, rpad - w.shape[0]),
                           (0, cpad - w.shape[1]))).astype(jnp.bfloat16)

    def pb(b, cpad):
        b2 = jnp.asarray(b).reshape(1, -1).astype(jnp.float32)
        return jnp.pad(b2, ((0, 0), (0, cpad - b2.shape[1])))

    pp = (
        pw(w_in, input_size, hid_pad), pb(b_in, hid_pad),
        pw(w_h0, hid_pad, hid_pad),    pb(b_h0, hid_pad),
        pw(w_h1, hid_pad, hid_pad),    pb(b_h1, hid_pad),
        pw(w_bi, hid_pad, bn_pad),     pb(b_bi, bn_pad),
        pw(w_bo, bn_pad, hid_pad),     pb(b_bo, hid_pad),
        pw(w_last, hid_pad, out_pad),  pb(b_last, out_pad),
    )

    # ---- generation-aware VMEM budget (v5e/v6e: 128 MiB, v7x: 64 MiB/TC) ----
    vmem_cap = _vmem_capacity_bytes()
    if vmem_limit_bytes is None:
        vmem_limit_bytes = max(32 << 20,
                               min(vmem_cap - (8 << 20), int(vmem_cap * 0.90)))
    if vmem_budget_bytes is None:
        vmem_budget_bytes = int(vmem_limit_bytes * 0.85)

    out_itemsize = jnp.dtype(x.dtype).itemsize
    weight_bytes = sum(int(a.size) * a.dtype.itemsize for a in pp)
    weight_buffers = 1 if single_buffer_weights else 2
    resident_weight_bytes = weight_buffers * weight_bytes

    # Double-buffered x / logits / bottleneck tiles + slack for intermediates.
    per_row_bytes = (2 * in_pad * 4
                     + 2 * (out_pad + bn_pad) * out_itemsize
                     + 8 * hid_pad * 4)
    avail = vmem_budget_bytes - resident_weight_bytes
    tm_cap = avail // per_row_bytes if avail > 0 else 0
    if tm_cap < _SUBLANE:
        # TODO(synk): weight-streaming (K-tiled accumulator) kernel for sizes
        # where resident weights blow the VMEM budget.
        raise ValueError(
            f"LID FFN weights ({resident_weight_bytes / 2**20:.1f} MiB resident) "
            f"do not fit the VMEM budget ({vmem_budget_bytes / 2**20:.1f} MiB) "
            "with a usable row tile; a weight-streaming kernel is required.")

    # ---- row tile: VMEM-capped, >=2 grid steps when possible, MXU-M aligned --
    tm = tm_cap if row_tile is None else max(int(row_tile), _SUBLANE)
    tm = min(tm, tm_cap)
    tm = min(tm, _round_up(pl.cdiv(R, 2), _SUBLANE))   # >=2 steps -> megacore
    if tm >= _MXU_M:
        tm = _round_down(tm, _MXU_M)                   # full MXU M passes
    else:
        tm = max(_SUBLANE, _round_down(tm, _SUBLANE))
    tm = max(_SUBLANE, min(tm, _round_up(R, _SUBLANE)))
    grid = (pl.cdiv(R, tm),)

    # ---- input: "input = input.detach()", flatten rows; NO pad/cast copy ----
    x2d = jax.lax.stop_gradient(x).reshape(R, input_size)

    if single_buffer_weights:
        def wspec(shape):
            return pl.BlockSpec(shape, lambda i: (0, 0),
                                pipeline_mode=pl.Buffered(1))
    else:
        def wspec(shape):
            return pl.BlockSpec(shape, lambda i: (0, 0))

    in_specs = [pl.BlockSpec((tm, input_size), lambda i: (i, 0))]
    in_specs += [wspec(p.shape) for p in pp]
    out_specs = [
        pl.BlockSpec((tm, out_pad), lambda i: (i, 0)),
        pl.BlockSpec((tm, bn_pad), lambda i: (i, 0)),
    ]

    logits_p, bneck_p = pl.pallas_call(
        _lid_ffn_kernel,
        out_shape=(
            jax.ShapeDtypeStruct((R, out_pad), x.dtype),
            jax.ShapeDtypeStruct((R, bn_pad), x.dtype),
        ),
        grid_spec=pltpu.PrefetchScalarGridSpec(
            num_scalar_prefetch=0,
            grid=grid,
            in_specs=in_specs,
            out_specs=out_specs,
        ),
        compiler_params=pltpu.CompilerParams(
            dimension_semantics=("parallel",),
            vmem_limit_bytes=int(vmem_limit_bytes),
        ),
    )(x2d, *pp)

    logits = logits_p[:, :output_size].reshape(seq_len, bsz, output_size)
    bottleneck = bneck_p[:, :bottleneck_size].reshape(
        seq_len, bsz, bottleneck_size)
    return logits, bottleneck


def init_params(key, input_size, hidden_size, bottleneck_size, output_size,
                n_hidden=2, dtype=jnp.float32):
    """Deterministic Linear params; weights stored as (in, out), biases (1, out)."""
    assert n_hidden == 2
    dims = [
        (input_size, hidden_size),        # linear_in
        (hidden_size, hidden_size),       # hiddens[0]
        (hidden_size, hidden_size),       # hiddens[1]
        (hidden_size, bottleneck_size),   # bottleneck_in
        (bottleneck_size, hidden_size),   # bottleneck_out
        (hidden_size, output_size),       # last_linear
    ]
    params = []
    for (fan_in, fan_out) in dims:
        key, kw, kb = jax.random.split(key, 3)
        bound = 1.0 / (fan_in ** 0.5)     # matches nn.Linear default init range
        w = jax.random.uniform(kw, (fan_in, fan_out), dtype, -bound, bound)
        b = jax.random.uniform(kb, (1, fan_out), dtype, -bound, bound)
        params += [w, b]
    return tuple(params)


def _reference_mixed(x, params):
    """Mirrors kernel numerics: bf16 matmul operands, f32 accumulate/bias/ReLU."""
    (w_in, b_in, w_h0, b_h0, w_h1, b_h1,
     w_bi, b_bi, w_bo, b_bo, w_last, b_last) = params

    def dense(h_bf16, w, b, relu=True):
        y = (h_bf16.astype(jnp.float32)
             @ w.astype(jnp.bfloat16).astype(jnp.float32)) + b
        return jnp.maximum(y, 0.0) if relu else y

    h = x.astype(jnp.bfloat16)
    h = dense(h, w_in, b_in).astype(jnp.bfloat16)
    h = dense(h, w_h0, b_h0).astype(jnp.bfloat16)
    h = dense(h, w_h1, b_h1).astype(jnp.bfloat16)
    bn = dense(h, w_bi, b_bi)
    h2 = dense(bn.astype(jnp.bfloat16), w_bo, b_bo).astype(jnp.bfloat16)
    logits = dense(h2, w_last, b_last, relu=False)
    return logits, bn


def _reference_f32(x, params):
    """Pure f32 reference: the original LIDFeedForward math (dropout p=0.0)."""
    (w_in, b_in, w_h0, b_h0, w_h1, b_h1,
     w_bi, b_bi, w_bo, b_bo, w_last, b_last) = params

    def dense(h, w, b, relu=True):
        y = h @ w + b
        return jnp.maximum(y, 0.0) if relu else y

    h = dense(x, w_in, b_in)
    h = dense(h, w_h0, b_h0)
    h = dense(h, w_h1, b_h1)
    bn = dense(h, w_bi, b_bi)
    h2 = dense(bn, w_bo, b_bo)
    logits = dense(h2, w_last, b_last, relu=False)
    return logits, bn


if __name__ == "__main__":
    # Small shapes; R = 27 with row_tile=16 exercises a 2-step grid plus a
    # ragged final row tile whose out-of-bounds writes Pallas discards.
    seq_len, bsz = 9, 3
    input_size, hidden_size, bottleneck_size, output_size = 32, 64, 16, 8

    key = jax.random.PRNGKey(0)
    key, kx = jax.random.split(key)
    x = jax.random.normal(kx, (seq_len, bsz, input_size), jnp.float32)
    params = init_params(key, input_size, hidden_size, bottleneck_size,
                         output_size, n_hidden=2)

    def run(single_buffer_weights):
        fn = jax.jit(functools.partial(
            lid_feed_forward, row_tile=16,
            single_buffer_weights=single_buffer_weights))
        return jax.block_until_ready(fn(x, params))

    try:
        logits, bottleneck = run(True)
    except Exception:
        # Fallback for jax builds whose TPU pallas_call lowering rejects
        # pipeline_mode=pl.Buffered(1): previously-validated double-buffered
        # weight specs (identical math, just more resident VMEM).
        logits, bottleneck = run(False)

    ref_logits, ref_bneck = _reference_mixed(x, params)
    f32_logits, f32_bneck = _reference_f32(x, params)

    assert logits.shape == (seq_len, bsz, output_size)
    assert bottleneck.shape == (seq_len, bsz, bottleneck_size)
    # Kernel matches its intended bf16-operand / f32-accumulate numerics.
    assert jnp.allclose(logits, ref_logits, atol=1e-2, rtol=1e-2), (
        float(jnp.max(jnp.abs(logits - ref_logits))))
    assert jnp.allclose(bottleneck, ref_bneck, atol=1e-2, rtol=1e-2), (
        float(jnp.max(jnp.abs(bottleneck - ref_bneck))))
    # Kernel is accurate vs. the original all-f32 module (bf16 error budget).
    assert jnp.allclose(logits, f32_logits, atol=1e-1, rtol=1e-1), (
        float(jnp.max(jnp.abs(logits - f32_logits))))
    assert jnp.allclose(bottleneck, f32_bneck, atol=1e-1, rtol=1e-1), (
        float(jnp.max(jnp.abs(bottleneck - f32_bneck))))
    print("KERNEL_OK")
</pallas_src>

<mosaic_0001>
module attributes {stable_mosaic.version = 11 : i64} {
  func.func @_lid_ffn_kernel(%arg0: i32, %arg1: memref<16x32xf32, #tpu.memory_space<vmem>>, %arg2: memref<32x128xbf16, #tpu.memory_space<vmem>>, %arg3: memref<1x128xf32, #tpu.memory_space<vmem>>, %arg4: memref<128x128xbf16, #tpu.memory_space<vmem>>, %arg5: memref<1x128xf32, #tpu.memory_space<vmem>>, %arg6: memref<128x128xbf16, #tpu.memory_space<vmem>>, %arg7: memref<1x128xf32, #tpu.memory_space<vmem>>, %arg8: memref<128x128xbf16, #tpu.memory_space<vmem>>, %arg9: memref<1x128xf32, #tpu.memory_space<vmem>>, %arg10: memref<128x128xbf16, #tpu.memory_space<vmem>>, %arg11: memref<1x128xf32, #tpu.memory_space<vmem>>, %arg12: memref<128x128xbf16, #tpu.memory_space<vmem>>, %arg13: memref<1x128xf32, #tpu.memory_space<vmem>>, %arg14: memref<16x128xf32, #tpu.memory_space<vmem>>, %arg15: memref<16x128xf32, #tpu.memory_space<vmem>>) attributes {dimension_semantics = [#tpu.dimension_semantics<parallel>], iteration_bounds = array<i64: 2>, scalar_prefetch = 0 : i64, scratch_operands = 0 : i64, tpu.core_type = #tpu.core_type<tc>, window_params = [{transform_indices = @transform_0, window_bounds = array<i64: 16, 32>}, {pipeline_mode = #tpu.pipeline_mode<synchronous>, transform_indices = @transform_1, window_bounds = array<i64: 32, 128>}, {pipeline_mode = #tpu.pipeline_mode<synchronous>, transform_indices = @transform_2, window_bounds = array<i64: 1, 128>}, {pipeline_mode = #tpu.pipeline_mode<synchronous>, transform_indices = @transform_3, window_bounds = array<i64: 128, 128>}, {pipeline_mode = #tpu.pipeline_mode<synchronous>, transform_indices = @transform_4, window_bounds = array<i64: 1, 128>}, {pipeline_mode = #tpu.pipeline_mode<synchronous>, transform_indices = @transform_5, window_bounds = array<i64: 128, 128>}, {pipeline_mode = #tpu.pipeline_mode<synchronous>, transform_indices = @transform_6, window_bounds = array<i64: 1, 128>}, {pipeline_mode = #tpu.pipeline_mode<synchronous>, transform_indices = @transform_7, window_bounds = array<i64: 128, 128>}, {pipeline_mode = #tpu.pipeline_mode<synchronous>, transform_indices = @transform_8, window_bounds = array<i64: 1, 128>}, {pipeline_mode = #tpu.pipeline_mode<synchronous>, transform_indices = @transform_9, window_bounds = array<i64: 128, 128>}, {pipeline_mode = #tpu.pipeline_mode<synchronous>, transform_indices = @transform_10, window_bounds = array<i64: 1, 128>}, {pipeline_mode = #tpu.pipeline_mode<synchronous>, transform_indices = @transform_11, window_bounds = array<i64: 128, 128>}, {pipeline_mode = #tpu.pipeline_mode<synchronous>, transform_indices = @transform_12, window_bounds = array<i64: 1, 128>}, {transform_indices = @transform_13, window_bounds = array<i64: 16, 128>}, {transform_indices = @transform_14, window_bounds = array<i64: 16, 128>}]} {
    %c0 = arith.constant 0 : index
    %c0_0 = arith.constant 0 : index
    %0 = vector.load %arg1[%c0, %c0_0] : memref<16x32xf32, #tpu.memory_space<vmem>>, vector<16x32xf32>
    %1 = arith.truncf %0 : vector<16x32xf32> to vector<16x32xbf16>
    %c0_1 = arith.constant 0 : index
    %c0_2 = arith.constant 0 : index
    %2 = vector.load %arg2[%c0_1, %c0_2] : memref<32x128xbf16, #tpu.memory_space<vmem>>, vector<32x128xbf16>
    %cst = arith.constant dense<0.000000e+00> : vector<16x128xf32>
    %3 = tpu.matmul %1, %2, %cst {dimension_numbers = #tpu.dot_dimension_numbers<[1], [0], [0], [1], [0, 0, 1, 1], [], []>} : vector<16x32xbf16>, vector<32x128xbf16>, vector<16x128xf32> -> vector<16x128xf32>
    %c0_3 = arith.constant 0 : index
    %c0_4 = arith.constant 0 : index
    %4 = vector.load %arg3[%c0_3, %c0_4] : memref<1x128xf32, #tpu.memory_space<vmem>>, vector<1x128xf32>
    %5 = vector.broadcast %4 : vector<1x128xf32> to vector<16x128xf32>
    %6 = arith.addf %3, %5 : vector<16x128xf32>
    %cst_5 = arith.constant 0.000000e+00 : f32
    %7 = vector.broadcast %cst_5 : f32 to vector<16x128xf32>
    %8 = arith.maximumf %6, %7 : vector<16x128xf32>
    %9 = arith.truncf %8 : vector<16x128xf32> to vector<16x128xbf16>
    %c0_6 = arith.constant 0 : index
    %c0_7 = arith.constant 0 : index
    %10 = vector.load %arg4[%c0_6, %c0_7] : memref<128x128xbf16, #tpu.memory_space<vmem>>, vector<128x128xbf16>
    %cst_8 = arith.constant dense<0.000000e+00> : vector<16x128xf32>
    %11 = tpu.matmul %9, %10, %cst_8 {dimension_numbers = #tpu.dot_dimension_numbers<[1], [0], [0], [1], [0, 0, 1, 1], [], []>} : vector<16x128xbf16>, vector<128x128xbf16>, vector<16x128xf32> -> vector<16x128xf32>
    %c0_9 = arith.constant 0 : index
    %c0_10 = arith.constant 0 : index
    %12 = vector.load %arg5[%c0_9, %c0_10] : memref<1x128xf32, #tpu.memory_space<vmem>>, vector<1x128xf32>
    %13 = vector.broadcast %12 : vector<1x128xf32> to vector<16x128xf32>
    %14 = arith.addf %11, %13 : vector<16x128xf32>
    %cst_11 = arith.constant 0.000000e+00 : f32
    %15 = vector.broadcast %cst_11 : f32 to vector<16x128xf32>
    %16 = arith.maximumf %14, %15 : vector<16x128xf32>
    %17 = arith.truncf %16 : vector<16x128xf32> to vector<16x128xbf16>
    %c0_12 = arith.constant 0 : index
    %c0_13 = arith.constant 0 : index
    %18 = vector.load %arg6[%c0_12, %c0_13] : memref<128x128xbf16, #tpu.memory_space<vmem>>, vector<128x128xbf16>
    %cst_14 = arith.constant dense<0.000000e+00> : vector<16x128xf32>
    %19 = tpu.matmul %17, %18, %cst_14 {dimension_numbers = #tpu.dot_dimension_numbers<[1], [0], [0], [1], [0, 0, 1, 1], [], []>} : vector<16x128xbf16>, vector<128x128xbf16>, vector<16x128xf32> -> vector<16x128xf32>
    %c0_15 = arith.constant 0 : index
    %c0_16 = arith.constant 0 : index
    %20 = vector.load %arg7[%c0_15, %c0_16] : memref<1x128xf32, #tpu.memory_space<vmem>>, vector<1x128xf32>
    %21 = vector.broadcast %20 : vector<1x128xf32> to vector<16x128xf32>
    %22 = arith.addf %19, %21 : vector<16x128xf32>
    %cst_17 = arith.constant 0.000000e+00 : f32
    %23 = vector.broadcast %cst_17 : f32 to vector<16x128xf32>
    %24 = arith.maximumf %22, %23 : vector<16x128xf32>
    %25 = arith.truncf %24 : vector<16x128xf32> to vector<16x128xbf16>
    %c0_18 = arith.constant 0 : index
    %c0_19 = arith.constant 0 : index
    %26 = vector.load %arg8[%c0_18, %c0_19] : memref<128x128xbf16, #tpu.memory_space<vmem>>, vector<128x128xbf16>
    %cst_20 = arith.constant dense<0.000000e+00> : vector<16x128xf32>
    %27 = tpu.matmul %25, %26, %cst_20 {dimension_numbers = #tpu.dot_dimension_numbers<[1], [0], [0], [1], [0, 0, 1, 1], [], []>} : vector<16x128xbf16>, vector<128x128xbf16>, vector<16x128xf32> -> vector<16x128xf32>
    %c0_21 = arith.constant 0 : index
    %c0_22 = arith.constant 0 : index
    %28 = vector.load %arg9[%c0_21, %c0_22] : memref<1x128xf32, #tpu.memory_space<vmem>>, vector<1x128xf32>
    %29 = vector.broadcast %28 : vector<1x128xf32> to vector<16x128xf32>
    %30 = arith.addf %27, %29 : vector<16x128xf32>
    %cst_23 = arith.constant 0.000000e+00 : f32
    %31 = vector.broadcast %cst_23 : f32 to vector<16x128xf32>
    %32 = arith.maximumf %30, %31 : vector<16x128xf32>
    %c0_24 = arith.constant 0 : index
    %c0_25 = arith.constant 0 : index
    %33 = vector.load %arg15[%c0_24, %c0_25] : memref<16x128xf32, #tpu.memory_space<vmem>>, vector<16x128xf32>
    tpu.vector_store %arg15[%c0_24, %c0_25], %32 {strides = array<i32>} : memref<16x128xf32, #tpu.memory_space<vmem>>, vector<16x128xf32>,
    %34 = arith.truncf %32 : vector<16x128xf32> to vector<16x128xbf16>
    %c0_26 = arith.constant 0 : index
    %c0_27 = arith.constant 0 : index
    %35 = vector.load %arg10[%c0_26, %c0_27] : memref<128x128xbf16, #tpu.memory_space<vmem>>, vector<128x128xbf16>
    %cst_28 = arith.constant dense<0.000000e+00> : vector<16x128xf32>
    %36 = tpu.matmul %34, %35, %cst_28 {dimension_numbers = #tpu.dot_dimension_numbers<[1], [0], [0], [1], [0, 0, 1, 1], [], []>} : vector<16x128xbf16>, vector<128x128xbf16>, vector<16x128xf32> -> vector<16x128xf32>
    %c0_29 = arith.constant 0 : index
    %c0_30 = arith.constant 0 : index
    %37 = vector.load %arg11[%c0_29, %c0_30] : memref<1x128xf32, #tpu.memory_space<vmem>>, vector<1x128xf32>
    %38 = vector.broadcast %37 : vector<1x128xf32> to vector<16x128xf32>
    %39 = arith.addf %36, %38 : vector<16x128xf32>
    %cst_31 = arith.constant 0.000000e+00 : f32
    %40 = vector.broadcast %cst_31 : f32 to vector<16x128xf32>
    %41 = arith.maximumf %39, %40 : vector<16x128xf32>
    %42 = arith.truncf %41 : vector<16x128xf32> to vector<16x128xbf16>
    %c0_32 = arith.constant 0 : index
    %c0_33 = arith.constant 0 : index
    %43 = vector.load %arg12[%c0_32, %c0_33] : memref<128x128xbf16, #tpu.memory_space<vmem>>, vector<128x128xbf16>
    %cst_34 = arith.constant dense<0.000000e+00> : vector<16x128xf32>
    %44 = tpu.matmul %42, %43, %cst_34 {dimension_numbers = #tpu.dot_dimension_numbers<[1], [0], [0], [1], [0, 0, 1, 1], [], []>} : vector<16x128xbf16>, vector<128x128xbf16>, vector<16x128xf32> -> vector<16x128xf32>
    %c0_35 = arith.constant 0 : index
    %c0_36 = arith.constant 0 : index
    %45 = vector.load %arg13[%c0_35, %c0_36] : memref<1x128xf32, #tpu.memory_space<vmem>>, vector<1x128xf32>
    %46 = vector.broadcast %45 : vector<1x128xf32> to vector<16x128xf32>
    %47 = arith.addf %44, %46 : vector<16x128xf32>
    %c0_37 = arith.constant 0 : index
    %c0_38 = arith.constant 0 : index
    %48 = vector.load %arg14[%c0_37, %c0_38] : memref<16x128xf32, #tpu.memory_space<vmem>>, vector<16x128xf32>
    tpu.vector_store %arg14[%c0_37, %c0_38], %47 {strides = array<i32>} : memref<16x128xf32, #tpu.memory_space<vmem>>, vector<16x128xf32>,
    return
  }
  func.func @transform_0(%arg0: i32) -> (i32, i32) {
    %c0_i32 = arith.constant 0 : i32
    %c0_i32_0 = arith.constant 0 : i32
    return %arg0, %c0_i32 : i32, i32
  }
  func.func @transform_1(%arg0: i32) -> (i32, i32) {
    %c0_i32 = arith.constant 0 : i32
    %c0_i32_0 = arith.constant 0 : i32
    %c0_i32_1 = arith.constant 0 : i32
    return %c0_i32, %c0_i32_0 : i32, i32
  }
  func.func @transform_2(%arg0: i32) -> (i32, i32) {
    %c0_i32 = arith.constant 0 : i32
    %c0_i32_0 = arith.constant 0 : i32
    %c0_i32_1 = arith.constant 0 : i32
    return %c0_i32, %c0_i32_0 : i32, i32
  }
  func.func @transform_3(%arg0: i32) -> (i32, i32) {
    %c0_i32 = arith.constant 0 : i32
    %c0_i32_0 = arith.constant 0 : i32
    %c0_i32_1 = arith.constant 0 : i32
    return %c0_i32, %c0_i32_0 : i32, i32
  }
  func.func @transform_4(%arg0: i32) -> (i32, i32) {
    %c0_i32 = arith.constant 0 : i32
    %c0_i32_0 = arith.constant 0 : i32
    %c0_i32_1 = arith.constant 0 : i32
    return %c0_i32, %c0_i32_0 : i32, i32
  }
  func.func @transform_5(%arg0: i32) -> (i32, i32) {
    %c0_i32 = arith.constant 0 : i32
    %c0_i32_0 = arith.constant 0 : i32
    %c0_i32_1 = arith.constant 0 : i32
    return %c0_i32, %c0_i32_0 : i32, i32
  }
  func.func @transform_6(%arg0: i32) -> (i32, i32) {
    %c0_i32 = arith.constant 0 : i32
    %c0_i32_0 = arith.constant 0 : i32
    %c0_i32_1 = arith.constant 0 : i32
    return %c0_i32, %c0_i32_0 : i32, i32
  }
  func.func @transform_7(%arg0: i32) -> (i32, i32) {
    %c0_i32 = arith.constant 0 : i32
    %c0_i32_0 = arith.constant 0 : i32
    %c0_i32_1 = arith.constant 0 : i32
    return %c0_i32, %c0_i32_0 : i32, i32
  }
  func.func @transform_8(%arg0: i32) -> (i32, i32) {
    %c0_i32 = arith.constant 0 : i32
    %c0_i32_0 = arith.constant 0 : i32
    %c0_i32_1 = arith.constant 0 : i32
    return %c0_i32, %c0_i32_0 : i32, i32
  }
  func.func @transform_9(%arg0: i32) -> (i32, i32) {
    %c0_i32 = arith.constant 0 : i32
    %c0_i32_0 = arith.constant 0 : i32
    %c0_i32_1 = arith.constant 0 : i32
    return %c0_i32, %c0_i32_0 : i32, i32
  }
  func.func @transform_10(%arg0: i32) -> (i32, i32) {
    %c0_i32 = arith.constant 0 : i32
    %c0_i32_0 = arith.constant 0 : i32
    %c0_i32_1 = arith.constant 0 : i32
    return %c0_i32, %c0_i32_0 : i32, i32
  }
  func.func @transform_11(%arg0: i32) -> (i32, i32) {
    %c0_i32 = arith.constant 0 : i32
    %c0_i32_0 = arith.constant 0 : i32
    %c0_i32_1 = arith.constant 0 : i32
    return %c0_i32, %c0_i32_0 : i32, i32
  }
  func.func @transform_12(%arg0: i32) -> (i32, i32) {
    %c0_i32 = arith.constant 0 : i32
    %c0_i32_0 = arith.constant 0 : i32
    %c0_i32_1 = arith.constant 0 : i32
    return %c0_i32, %c0_i32_0 : i32, i32
  }
  func.func @transform_13(%arg0: i32) -> (i32, i32) {
    %c0_i32 = arith.constant 0 : i32
    %c0_i32_0 = arith.constant 0 : i32
    return %arg0, %c0_i32 : i32, i32
  }
  func.func @transform_14(%arg0: i32) -> (i32, i32) {
    %c0_i32 = arith.constant 0 : i32
    %c0_i32_0 = arith.constant 0 : i32
    return %arg0, %c0_i32 : i32, i32
  }
}

module attributes {stable_mosaic.version = 11 : i64} {
  func.func @_lid_ffn_kernel(%arg0: i32, %arg1: memref<16x32xf32, #tpu.memory_space<vmem>>, %arg2: memref<32x128xbf16, #tpu.memory_space<vmem>>, %arg3: memref<1x128xf32, #tpu.memory_space<vmem>>, %arg4: memref<128x128xbf16, #tpu.memory_space<vmem>>, %arg5: memref<1x128xf32, #tpu.memory_space<vmem>>, %arg6: memref<128x128xbf16, #tpu.memory_space<vmem>>, %arg7: memref<1x128xf32, #tpu.memory_space<vmem>>, %arg8: memref<128x128xbf16, #tpu.memory_space<vmem>>, %arg9: memref<1x128xf32, #tpu.memory_space<vmem>>, %arg10: memref<128x128xbf16, #tpu.memory_space<vmem>>, %arg11: memref<1x128xf32, #tpu.memory_space<vmem>>, %arg12: memref<128x128xbf16, #tpu.memory_space<vmem>>, %arg13: memref<1x128xf32, #tpu.memory_space<vmem>>, %arg14: memref<16x128xf32, #tpu.memory_space<vmem>>, %arg15: memref<16x128xf32, #tpu.memory_space<vmem>>) attributes {dimension_semantics = [#tpu.dimension_semantics<parallel>], iteration_bounds = array<i64: 2>, scalar_prefetch = 0 : i64, scratch_operands = 0 : i64, tpu.core_type = #tpu.core_type<tc>, window_params = [{transform_indices = @transform_0, window_bounds = array<i64: 16, 32>}, {pipeline_mode = #tpu.pipeline_mode<synchronous>, transform_indices = @transform_1, window_bounds = array<i64: 32, 128>}, {pipeline_mode = #tpu.pipeline_mode<synchronous>, transform_indices = @transform_2, window_bounds = array<i64: 1, 128>}, {pipeline_mode = #tpu.pipeline_mode<synchronous>, transform_indices = @transform_3, window_bounds = array<i64: 128, 128>}, {pipeline_mode = #tpu.pipeline_mode<synchronous>, transform_indices = @transform_4, window_bounds = array<i64: 1, 128>}, {pipeline_mode = #tpu.pipeline_mode<synchronous>, transform_indices = @transform_5, window_bounds = array<i64: 128, 128>}, {pipeline_mode = #tpu.pipeline_mode<synchronous>, transform_indices = @transform_6, window_bounds = array<i64: 1, 128>}, {pipeline_mode = #tpu.pipeline_mode<synchronous>, transform_indices = @transform_7, window_bounds = array<i64: 128, 128>}, {pipeline_mode = #tpu.pipeline_mode<synchronous>, transform_indices = @transform_8, window_bounds = array<i64: 1, 128>}, {pipeline_mode = #tpu.pipeline_mode<synchronous>, transform_indices = @transform_9, window_bounds = array<i64: 128, 128>}, {pipeline_mode = #tpu.pipeline_mode<synchronous>, transform_indices = @transform_10, window_bounds = array<i64: 1, 128>}, {pipeline_mode = #tpu.pipeline_mode<synchronous>, transform_indices = @transform_11, window_bounds = array<i64: 128, 128>}, {pipeline_mode = #tpu.pipeline_mode<synchronous>, transform_indices = @transform_12, window_bounds = array<i64: 1, 128>}, {transform_indices = @transform_13, window_bounds = array<i64: 16, 128>}, {transform_indices = @transform_14, window_bounds = array<i64: 16, 128>}]} {
    %c0 = arith.constant 0 : index
    %c0_0 = arith.constant 0 : index
    %0 = vector.load %arg1[%c0, %c0_0] : memref<16x32xf32, #tpu.memory_space<vmem>>, vector<16x32xf32>
    %1 = arith.truncf %0 : vector<16x32xf32> to vector<16x32xbf16>
    %c0_1 = arith.constant 0 : index
    %c0_2 = arith.constant 0 : index
    %2 = vector.load %arg2[%c0_1, %c0_2] : memref<32x128xbf16, #tpu.memory_space<vmem>>, vector<32x128xbf16>
    %cst = arith.constant dense<0.000000e+00> : vector<16x128xf32>
    %3 = tpu.matmul %1, %2, %cst {dimension_numbers = #tpu.dot_dimension_numbers<[1], [0], [0], [1], [0, 0, 1, 1], [], []>} : vector<16x32xbf16>, vector<32x128xbf16>, vector<16x128xf32> -> vector<16x128xf32>
    %c0_3 = arith.constant 0 : index
    %c0_4 = arith.constant 0 : index
    %4 = vector.load %arg3[%c0_3, %c0_4] : memref<1x128xf32, #tpu.memory_space<vmem>>, vector<1x128xf32>
    %5 = vector.broadcast %4 : vector<1x128xf32> to vector<16x128xf32>
    %6 = arith.addf %3, %5 : vector<16x128xf32>
    %cst_5 = arith.constant 0.000000e+00 : f32
    %7 = vector.broadcast %cst_5 : f32 to vector<16x128xf32>
    %8 = arith.maximumf %6, %7 : vector<16x128xf32>
    %9 = arith.truncf %8 : vector<16x128xf32> to vector<16x128xbf16>
    %c0_6 = arith.constant 0 : index
    %c0_7 = arith.constant 0 : index
    %10 = vector.load %arg4[%c0_6, %c0_7] : memref<128x128xbf16, #tpu.memory_space<vmem>>, vector<128x128xbf16>
    %cst_8 = arith.constant dense<0.000000e+00> : vector<16x128xf32>
    %11 = tpu.matmul %9, %10, %cst_8 {dimension_numbers = #tpu.dot_dimension_numbers<[1], [0], [0], [1], [0, 0, 1, 1], [], []>} : vector<16x128xbf16>, vector<128x128xbf16>, vector<16x128xf32> -> vector<16x128xf32>
    %c0_9 = arith.constant 0 : index
    %c0_10 = arith.constant 0 : index
    %12 = vector.load %arg5[%c0_9, %c0_10] : memref<1x128xf32, #tpu.memory_space<vmem>>, vector<1x128xf32>
    %13 = vector.broadcast %12 : vector<1x128xf32> to vector<16x128xf32>
    %14 = arith.addf %11, %13 : vector<16x128xf32>
    %cst_11 = arith.constant 0.000000e+00 : f32
    %15 = vector.broadcast %cst_11 : f32 to vector<16x128xf32>
    %16 = arith.maximumf %14, %15 : vector<16x128xf32>
    %17 = arith.truncf %16 : vector<16x128xf32> to vector<16x128xbf16>
    %c0_12 = arith.constant 0 : index
    %c0_13 = arith.constant 0 : index
    %18 = vector.load %arg6[%c0_12, %c0_13] : memref<128x128xbf16, #tpu.memory_space<vmem>>, vector<128x128xbf16>
    %cst_14 = arith.constant dense<0.000000e+00> : vector<16x128xf32>
    %19 = tpu.matmul %17, %18, %cst_14 {dimension_numbers = #tpu.dot_dimension_numbers<[1], [0], [0], [1], [0, 0, 1, 1], [], []>} : vector<16x128xbf16>, vector<128x128xbf16>, vector<16x128xf32> -> vector<16x128xf32>
    %c0_15 = arith.constant 0 : index
    %c0_16 = arith.constant 0 : index
    %20 = vector.load %arg7[%c0_15, %c0_16] : memref<1x128xf32, #tpu.memory_space<vmem>>, vector<1x128xf32>
    %21 = vector.broadcast %20 : vector<1x128xf32> to vector<16x128xf32>
    %22 = arith.addf %19, %21 : vector<16x128xf32>
    %cst_17 = arith.constant 0.000000e+00 : f32
    %23 = vector.broadcast %cst_17 : f32 to vector<16x128xf32>
    %24 = arith.maximumf %22, %23 : vector<16x128xf32>
    %25 = arith.truncf %24 : vector<16x128xf32> to vector<16x128xbf16>
    %c0_18 = arith.constant 0 : index
    %c0_19 = arith.constant 0 : index
    %26 = vector.load %arg8[%c0_18, %c0_19] : memref<128x128xbf16, #tpu.memory_space<vmem>>, vector<128x128xbf16>
    %cst_20 = arith.constant dense<0.000000e+00> : vector<16x128xf32>
    %27 = tpu.matmul %25, %26, %cst_20 {dimension_numbers = #tpu.dot_dimension_numbers<[1], [0], [0], [1], [0, 0, 1, 1], [], []>} : vector<16x128xbf16>, vector<128x128xbf16>, vector<16x128xf32> -> vector<16x128xf32>
    %c0_21 = arith.constant 0 : index
    %c0_22 = arith.constant 0 : index
    %28 = vector.load %arg9[%c0_21, %c0_22] : memref<1x128xf32, #tpu.memory_space<vmem>>, vector<1x128xf32>
    %29 = vector.broadcast %28 : vector<1x128xf32> to vector<16x128xf32>
    %30 = arith.addf %27, %29 : vector<16x128xf32>
    %cst_23 = arith.constant 0.000000e+00 : f32
    %31 = vector.broadcast %cst_23 : f32 to vector<16x128xf32>
    %32 = arith.maximumf %30, %31 : vector<16x128xf32>
    %c0_24 = arith.constant 0 : index
    %c0_25 = arith.constant 0 : index
    %33 = vector.load %arg15[%c0_24, %c0_25] : memref<16x128xf32, #tpu.memory_space<vmem>>, vector<16x128xf32>
    tpu.vector_store %arg15[%c0_24, %c0_25], %32 {strides = array<i32>} : memref<16x128xf32, #tpu.memory_space<vmem>>, vector<16x128xf32>,
    %34 = arith.truncf %32 : vector<16x128xf32> to vector<16x128xbf16>
    %c0_26 = arith.constant 0 : index
    %c0_27 = arith.constant 0 : index
    %35 = vector.load %arg10[%c0_26, %c0_27] : memref<128x128xbf16, #tpu.memory_space<vmem>>, vector<128x128xbf16>
    %cst_28 = arith.constant dense<0.000000e+00> : vector<16x128xf32>
    %36 = tpu.matmul %34, %35, %cst_28 {dimension_numbers = #tpu.dot_dimension_numbers<[1], [0], [0], [1], [0, 0, 1, 1], [], []>} : vector<16x128xbf16>, vector<128x128xbf16>, vector<16x128xf32> -> vector<16x128xf32>
    %c0_29 = arith.constant 0 : index
    %c0_30 = arith.constant 0 : index
    %37 = vector.load %arg11[%c0_29, %c0_30] : memref<1x128xf32, #tpu.memory_space<vmem>>, vector<1x128xf32>
    %38 = vector.broadcast %37 : vector<1x128xf32> to vector<16x128xf32>
    %39 = arith.addf %36, %38 : vector<16x128xf32>
    %cst_31 = arith.constant 0.000000e+00 : f32
    %40 = vector.broadcast %cst_31 : f32 to vector<16x128xf32>
    %41 = arith.maximumf %39, %40 : vector<16x128xf32>
    %42 = arith.truncf %41 : vector<16x128xf32> to vector<16x128xbf16>
    %c0_32 = arith.constant 0 : index
    %c0_33 = arith.constant 0 : index
    %43 = vector.load %arg12[%c0_32, %c0_33] : memref<128x128xbf16, #tpu.memory_space<vmem>>, vector<128x128xbf16>
    %cst_34 = arith.constant dense<0.000000e+00> : vector<16x128xf32>
    %44 = tpu.matmul %42, %43, %cst_34 {dimension_numbers = #tpu.dot_dimension_numbers<[1], [0], [0], [1], [0, 0, 1, 1], [], []>} : vector<16x128xbf16>, vector<128x128xbf16>, vector<16x128xf32> -> vector<16x128xf32>
    %c0_35 = arith.constant 0 : index
    %c0_36 = arith.constant 0 : index
    %45 = vector.load %arg13[%c0_35, %c0_36] : memref<1x128xf32, #tpu.memory_space<vmem>>, vector<1x128xf32>
    %46 = vector.broadcast %45 : vector<1x128xf32> to vector<16x128xf32>
    %47 = arith.addf %44, %46 : vector<16x128xf32>
    %c0_37 = arith.constant 0 : index
    %c0_38 = arith.constant 0 : index
    %48 = vector.load %arg14[%c0_37, %c0_38] : memref<16x128xf32, #tpu.memory_space<vmem>>, vector<16x128xf32>
    tpu.vector_store %arg14[%c0_37, %c0_38], %47 {strides = array<i32>} : memref<16x128xf32, #tpu.memory_space<vmem>>, vector<16x128xf32>,
    return
  }
  func.func @transform_0(%arg0: i32) -> (i32, i32) {
    %c0_i32 = arith.constant 0 : i32
    %c0_i32_0 = arith.constant 0 : i32
    return %arg0, %c0_i32 : i32, i32
  }
  func.func @transform_1(%arg0: i32) -> (i32, i32) {
    %c0_i32 = arith.constant 0 : i32
    %c0_i32_0 = arith.constant 0 : i32
    %c0_i32_1 = arith.constant 0 : i32
    return %c0_i32, %c0_i32_0 : i32, i32
  }
  func.func @transform_2(%arg0: i32) -> (i32, i32) {
    %c0_i32 = arith.constant 0 : i32
    %c0_i32_0 = arith.constant 0 : i32
    %c0_i32_1 = arith.constant 0 : i32
    return %c0_i32, %c0_i32_0 : i32, i32
  }
  func.func @transform_3(%arg0: i32) -> (i32, i32) {
    %c0_i32 = arith.constant 0 : i32
    %c0_i32_0 = arith.constant 0 : i32
    %c0_i32_1 = arith.constant 0 : i32
    return %c0_i32, %c0_i32_0 : i32, i32
  }
  func.func @transform_4(%arg0: i32) -> (i32, i32) {
    %c0_i32 = arith.constant 0 : i32
    %c0_i32_0 = arith.constant 0 : i32
    %c0_i32_1 = arith.constant 0 : i32
    return %c0_i32, %c0_i32_0 : i32, i32
  }
  func.func @transform_5(%arg0: i32) -> (i32, i32) {
    %c0_i32 = arith.constant 0 : i32
    %c0_i32_0 = arith.constant 0 : i32
    %c0_i32_1 = arith.constant 0 : i32
    return %c0_i32, %c0_i32_0 : i32, i32
  }
  func.func @transform_6(%arg0: i32) -> (i32, i32) {
    %c0_i32 = arith.constant 0 : i32
    %c0_i32_0 = arith.constant 0 : i32
    %c0_i32_1 = arith.constant 0 : i32
    return %c0_i32, %c0_i32_0 : i32, i32
  }
  func.func @transform_7(%arg0: i32) -> (i32, i32) {
    %c0_i32 = arith.constant 0 : i32
    %c0_i32_0 = arith.constant 0 : i32
    %c0_i32_1 = arith.constant 0 : i32
    return %c0_i32, %c0_i32_0 : i32, i32
  }
  func.func @transform_8(%arg0: i32) -> (i32, i32) {
    %c0_i32 = arith.constant 0 : i32
    %c0_i32_0 = arith.constant 0 : i32
    %c0_i32_1 = arith.constant 0 : i32
    return %c0_i32, %c0_i32_0 : i32, i32
  }
  func.func @transform_9(%arg0: i32) -> (i32, i32) {
    %c0_i32 = arith.constant 0 : i32
    %c0_i32_0 = arith.constant 0 : i32
    %c0_i32_1 = arith.constant 0 : i32
    return %c0_i32, %c0_i32_0 : i32, i32
  }
  func.func @transform_10(%arg0: i32) -> (i32, i32) {
    %c0_i32 = arith.constant 0 : i32
    %c0_i32_0 = arith.constant 0 : i32
    %c0_i32_1 = arith.constant 0 : i32
    return %c0_i32, %c0_i32_0 : i32, i32
  }
  func.func @transform_11(%arg0: i32) -> (i32, i32) {
    %c0_i32 = arith.constant 0 : i32
    %c0_i32_0 = arith.constant 0 : i32
    %c0_i32_1 = arith.constant 0 : i32
    return %c0_i32, %c0_i32_0 : i32, i32
  }
  func.func @transform_12(%arg0: i32) -> (i32, i32) {
    %c0_i32 = arith.constant 0 : i32
    %c0_i32_0 = arith.constant 0 : i32
    %c0_i32_1 = arith.constant 0 : i32
    return %c0_i32, %c0_i32_0 : i32, i32
  }
  func.func @transform_13(%arg0: i32) -> (i32, i32) {
    %c0_i32 = arith.constant 0 : i32
    %c0_i32_0 = arith.constant 0 : i32
    return %arg0, %c0_i32 : i32, i32
  }
  func.func @transform_14(%arg0: i32) -> (i32, i32) {
    %c0_i32 = arith.constant 0 : i32
    %c0_i32_0 = arith.constant 0 : i32
    return %arg0, %c0_i32 : i32, i32
  }
}

</mosaic_0001>

<bundles_post_ra>
// kernel: lid_feed_forward.1
= control target key start
LH: loop header
LB: loop body
LE: loop exit
PB: predicated region body
PF: predicated region fallthrough
CT: control target
= control target key end

     0   :  { %s1581_s29 = smov 0   ;;  %s1804_s0 = inlined_call_operand.vmem [shape: f32[27,32], index: 0, kind: input, shape index: {}]   ;;  %s1805_s1 = inlined_call_operand.vmem [shape: bf16[32,128], index: 1, kind: input, shape index: {}]   ;;  %s1806_s2 = inlined_call_operand.vmem [shape: f32[1,128], index: 2, kind: input, shape index: {}]   ;;  %s1807_s3 = inlined_call_operand.vmem [shape: bf16[128,128], index: 3, kind: input, shape index: {}]   ;;  %s1808_s4 = inlined_call_operand.vmem [shape: f32[1,128], index: 4, kind: input, shape index: {}]   ;;  %s1809_s5 = inlined_call_operand.vmem [shape: bf16[128,128], index: 5, kind: input, shape index: {}]   ;;  %s1810_s6 = inlined_call_operand.vmem [shape: f32[1,128], index: 6, kind: input, shape index: {}]   ;;  %s1811_s7 = inlined_call_operand.vmem [shape: bf16[128,128], index: 7, kind: input, shape index: {}]   ;;  %s1812_s8 = inlined_call_operand.vmem [shape: f32[1,128], index: 8, kind: input, shape index: {}]   ;;  %s1813_s9 = inlined_call_operand.vmem [shape: bf16[128,128], index: 9, kind: input, shape index: {}]   ;;  %s1814_s10 = inlined_call_operand.vmem [shape: f32[1,128], index: 10, kind: input, shape index: {}]   ;;  %s1815_s11 = inlined_call_operand.vmem [shape: bf16[128,128], index: 11, kind: input, shape index: {}]   ;;  %s1816_s12 = inlined_call_operand.vmem [shape: f32[1,128], index: 12, kind: input, shape index: {}]   ;;  %s1817_s13 = inlined_call_operand.vmem [shape: f32[27,128], index: 13, kind: output, shape index: {0}]   ;;  %s1818_s14 = inlined_call_operand.vmem [shape: f32[27,128], index: 14, kind: output, shape index: {1}]  }
   0x1 LB: > { %s1226_s30 = sadd.s32 4294967295, %s1502_s29   ;;  %p1230_p0 = scmp.ge.s32.totalorder %s1502_s29, 1  ;;  %s1502_s29 = sphi %s1581_s29, %s25_s29  }
   0x2   : > { %p416_p1 = scmp.lt.s32.totalorder %s1502_s29, 3 }
   0x4   : > { %p417_p2 = pnand %p1230_p0, %p416_p1 }
   0x5   : > { %s1231_s19 = sshll.u32 (!%p417_p2), %s1226_s30, 1 }
   0x6   : > { %420 = sbr.rel (%p417_p2) target bundleno = 1235 (0x4d3), region = 72  ;;  %p468_p3 = scmp.lt.s32.totalorder (!%p417_p2), %s1231_s19, 3 }
   0xb   : > { %v1454_v0 = vld [vmem:[%s1805_s1 + $0x8] sm:$0xff]   ;;  %v1504_v1 = vmov 0.0   ;;  %v1455_v2 = vld [vmem:[%s1805_s1] sm:$0xff]   ;;  %vm1505_vm0 = vmmov 0   ;;  %v1456_v3 = vld [vmem:[%s1807_s3 + $0x38] sm:$0xff]   ;;  %s1820_s19 = smov (!%p468_p3, %s1231_s19), 3 }
   0xc   : > { %1336 = vmatprep.subr.bf16.mxu0 %v1504_v1  ;;  %1344 = vmatprep.subr.bf16.mxu1 %v1504_v1  ;;  %v1457_v4 = vld [vmem:[%s1807_s3 + $0x30] sm:$0xff]   ;;  %s1609_s24 = sshll.u32 %s1820_s19, 3  ;;  %v1458_v5 = vld [vmem:[%s1807_s3 + $0x28] sm:$0xff]   ;;  %vm512_vm1 = vcmask 261120   ;;  %v1459_v9 = vld [vmem:[%s1807_s3 + $0x20] sm:$0xff]  }
   0xd   : > { %1337 = vmatpush3.bf16.msra.mxu0 %v1454_v0  ;;  %1340 = vmatprep.mubr.msk.bf16.mxu0 %vm1505_vm0, %v1504_v1  ;;  %s471_s30 = scalar_lea.vmem %s1804_s0, %s1609_s24  ;;  %v1460_v10 = vld [vmem:[%s1807_s3 + $0x18] sm:$0xff]   ;;  %v1461_v11 = vld [vmem:[%s1807_s3 + $0x10] sm:$0xff]   ;;  %v1462_v12 = vld [vmem:[%s1807_s3 + $0x8] sm:$0xff]   ;;  %s483_s23 = scalar_lea.vmem %s1818_s14, %s1609_s24 }
   0xe   : > { %1338 = vmatprep.subr.bf16.mxu0 %v1504_v1  ;;  %1360 = vmatprep.mubr.msk.bf16.mxu1 %vm1505_vm0, %v1504_v1  ;;  %v486_v6 = vld [vmem:[%s471_s30] sm:$0xff]  ;;  %v487_v7 = vld [vmem:[%s471_s30 + $0x8] sm:$0xff]  ;;  %v1464_v14 = vld [vmem:[%s1809_s5 + $0x38] sm:$0xff]   ;;  %s477_s22 = scalar_lea.vmem %s1817_s13, %s1609_s24 }
   0xf   : > { %1345 = vmatpush3.bf16.msra.mxu1 %v1456_v3  ;;  %v488_v8 = vpack.c.bf16 %v487_v7, %v486_v6  ;;  %v1463_v13 = vld [vmem:[%s1807_s3] sm:$0xff]   ;;  %v1465_v15 = vld [vmem:[%s1809_s5 + $0x30] sm:$0xff]   ;;  %v1466_v16 = vld [vmem:[%s1809_s5 + $0x28] sm:$0xff]  }
  0x10   : > { %1346 = vmatprep.subr.bf16.mxu1 %v1504_v1  ;;  %v1467_v17 = vld [vmem:[%s1809_s5 + $0x20] sm:$0xff]   ;;  %v1468_v18 = vld [vmem:[%s1809_s5 + $0x18] sm:$0xff]   ;;  %v1469_v29 = vld [vmem:[%s1809_s5 + $0x10] sm:$0xff]  }
  0x11   : > { %1339 = vmatpush3.bf16.msra.mxu0 %v1455_v2  ;;  %v1237_v19 = vld [vmem:[%s1806_s2] ss:$0 sm:$0xff]  ;;  %v1470_v30 = vld [vmem:[%s1809_s5 + $0x8] sm:$0xff]   ;;  %v1472_v32 = vld [vmem:[%s1811_s7 + $0x38] sm:$0xff]  }
  0x12   : > { %1364 = vmatprep.subr.bf16.mxu0 %v1504_v1  ;;  %v1471_v31 = vld [vmem:[%s1809_s5] sm:$0xff]   ;;  %v1473_v33 = vld [vmem:[%s1811_s7 + $0x30] sm:$0xff]   ;;  %v1474_v34 = vld [vmem:[%s1811_s7 + $0x28] sm:$0xff]  }
  0x13   : > { %1347 = vmatpush3.bf16.msra.mxu1 %v1457_v4  ;;  %v1475_v35 = vld [vmem:[%s1811_s7 + $0x20] sm:$0xff]   ;;  %v1476_v36 = vld [vmem:[%s1811_s7 + $0x18] sm:$0xff]   ;;  %v1477_v47 = vld [vmem:[%s1811_s7 + $0x10] sm:$0xff]  }
  0x14   : > { %1348 = vmatprep.subr.bf16.mxu1 %v1504_v1  ;;  %1341 = vmatmul.mubr.msk.bf16.vlgmr.msra.gmra.mxu0 %vm512_vm1, %v488_v8  ;;  %v1241_v37 = vld [vmem:[%s1808_s4] ss:$0 sm:$0xff]  ;;  %v1478_v48 = vld [vmem:[%s1811_s7 + $0x8] sm:$0xff]   ;;  %v1480_v50 = vld [vmem:[%s1813_s9 + $0x38] sm:$0xff]  }
  0x15   : > { %1380 = vmatprep.mubr.msk.bf16.mxu0 %vm1505_vm0, %v1504_v1  ;;  %1365 = vmatpush3.bf16.msra.mxu0 %v1464_v14  ;;  %v1479_v49 = vld [vmem:[%s1811_s7] sm:$0xff]   ;;  %v1481_v51 = vld [vmem:[%s1813_s9 + $0x30] sm:$0xff]   ;;  %v1482_v52 = vld [vmem:[%s1813_s9 + $0x28] sm:$0xff]  }
  0x16   : > { %1366 = vmatprep.subr.bf16.mxu0 %v1504_v1  ;;  %v1483_v53 = vld [vmem:[%s1813_s9 + $0x20] sm:$0xff]   ;;  %v1484_v54 = vld [vmem:[%s1813_s9 + $0x18] sm:$0xff]   ;;  %v1485_v2 = vld [vmem:[%s1813_s9 + $0x10] sm:$0xff]  }
  0x17   : > { %1349 = vmatpush3.bf16.msra.mxu1 %v1458_v5  ;;  %v1250_v55 = vld [vmem:[%s1810_s6] ss:$0 sm:$0xff]  ;;  %v1486_v3 = vld [vmem:[%s1813_s9 + $0x8] sm:$0xff]   ;;  %v1488_v5 = vld [vmem:[%s1815_s11 + $0x38] sm:$0xff]  }
  0x18   : > { %1350 = vmatprep.subr.bf16.mxu1 %v1504_v1  ;;  %v1487_v4 = vld [vmem:[%s1813_s9] sm:$0xff]   ;;  %v1489_v6 = vld [vmem:[%s1815_s11 + $0x30] sm:$0xff]   ;;  %v1490_v7 = vld [vmem:[%s1815_s11 + $0x28] sm:$0xff]  }
  0x19   : > { %1367 = vmatpush3.bf16.msra.mxu0 %v1465_v15  ;;  %v1491_v8 = vld [vmem:[%s1815_s11 + $0x20] sm:$0xff]  }
  0x1a   : > { %1368 = vmatprep.subr.bf16.mxu0 %v1504_v1 }
  0x1b   : > { %1351 = vmatpush3.bf16.msra.mxu1 %v1459_v9  ;;  %v1492_v9 = vld [vmem:[%s1815_s11 + $0x18] sm:$0xff]  }
  0x1c   : > { %1352 = vmatprep.subr.bf16.mxu1 %v1504_v1 }
  0x1d   : > { %1369 = vmatpush3.bf16.msra.mxu0 %v1466_v16 }
  0x1e   : > { %1370 = vmatprep.subr.bf16.mxu0 %v1504_v1 }
  0x1f   : > { %1353 = vmatpush3.bf16.msra.mxu1 %v1460_v10  ;;  %v1259_v10 = vld [vmem:[%s1812_s8] ss:$0 sm:$0xff] }
  0x20   : > { %1354 = vmatprep.subr.bf16.mxu1 %v1504_v1 }
  0x21   : > { %1371 = vmatpush3.bf16.msra.mxu0 %v1467_v17 }
  0x22   : > { %1372 = vmatprep.subr.bf16.mxu0 %v1504_v1 }
  0x23   : > { %1355 = vmatpush3.bf16.msra.mxu1 %v1461_v11 }
  0x24   : > { %1356 = vmatprep.subr.bf16.mxu1 %v1504_v1 }
  0x25   : > { %1373 = vmatpush3.bf16.msra.mxu0 %v1468_v18 }
  0x26   : > { %1374 = vmatprep.subr.bf16.mxu0 %v1504_v1 }
  0x27   : > { %1357 = vmatpush3.bf16.msra.mxu1 %v1462_v12 }
  0x28   : > { %1358 = vmatprep.subr.bf16.mxu1 %v1504_v1 }
  0x29   : > { %1375 = vmatpush3.bf16.msra.mxu0 %v1469_v29 }
  0x2a   : > { %1376 = vmatprep.subr.bf16.mxu0 %v1504_v1 }
  0x2b   : > { %1359 = vmatpush3.bf16.msra.mxu1 %v1463_v13 }
  0x2c   : > { %1384 = vmatprep.subr.bf16.mxu1 %v1504_v1 }
  0x2d   : > { %1377 = vmatpush3.bf16.msra.mxu0 %v1470_v30 }
  0x2e   : > { %1378 = vmatprep.subr.bf16.mxu0 %v1504_v1 }
  0x31   : > { %1379 = vmatpush3.bf16.msra.mxu0 %v1471_v31 }
  0x32   : > { %1404 = vmatprep.subr.bf16.mxu0 %v1504_v1 }
  0xd4   : > { %v550_v20 = vpop.f32.mrf.mxu0 }
  0xd5   : > { %v551_v22 = vadd.f32 %v1237_v19, %v550_v20  ;;  %v1493_v20 = vld [vmem:[%s1815_s11 + $0x10] sm:$0xff]  }
  0xd6   : > { %v1342_v21 = vpop.f32.mrf.mxu0 }
  0xd7   : > { %v557_v26 = vmax.f32 %v551_v22, 0.0  ;;  %v1494_v21 = vld [vmem:[%s1815_s11 + $0x8] sm:$0xff]   ;;  %v1495_v22 = vld [vmem:[%s1815_s11] sm:$0xff]  }
  0xd8   : > { %v553_v23 = vpop.f32.mrf.mxu0 }
  0xd9   : > { %v554_v24 = vadd.f32 %v1237_v19, %v553_v23  ;;  %v1268_v23 = vld [vmem:[%s1814_s10] ss:$0 sm:$0xff] }
  0xda   : > { %v1343_v25 = vpop.f32.mrf.mxu0 }
  0xdb   : > { %v558_v27 = vmax.f32 %v554_v24, 0.0 }
  0xdd   : > { %v559_v28 = vpack.c.bf16 %v558_v27, %v557_v26 }
  0xdf   : > { %1361 = vmatmul.mubr.bf16.vlgmr.msra.gmra.mxu1 %v559_v28 }
  0xe0   : > { %1400 = vmatprep.mubr.msk.bf16.mxu1 %vm1505_vm0, %v1504_v1  ;;  %1385 = vmatpush3.bf16.msra.mxu1 %v1472_v32 }
  0xe1   : > { %1386 = vmatprep.subr.bf16.mxu1 %v1504_v1 }
  0xe4   : > { %1387 = vmatpush3.bf16.msra.mxu1 %v1473_v33 }
  0xe5   : > { %1388 = vmatprep.subr.bf16.mxu1 %v1504_v1 }
  0xe8   : > { %1389 = vmatpush3.bf16.msra.mxu1 %v1474_v34 }
  0xe9   : > { %1390 = vmatprep.subr.bf16.mxu1 %v1504_v1 }
  0xec   : > { %1391 = vmatpush3.bf16.msra.mxu1 %v1475_v35 }
  0xed   : > { %1392 = vmatprep.subr.bf16.mxu1 %v1504_v1 }
  0xf0   : > { %1393 = vmatpush3.bf16.msra.mxu1 %v1476_v36 }
  0xf1   : > { %1394 = vmatprep.subr.bf16.mxu1 %v1504_v1 }
  0xf4   : > { %1395 = vmatpush3.bf16.msra.mxu1 %v1477_v47 }
  0xf5   : > { %1396 = vmatprep.subr.bf16.mxu1 %v1504_v1 }
  0xf8   : > { %1397 = vmatpush3.bf16.msra.mxu1 %v1478_v48 }
  0xf9   : > { %1398 = vmatprep.subr.bf16.mxu1 %v1504_v1 }
  0xfc   : > { %1399 = vmatpush3.bf16.msra.mxu1 %v1479_v49 }
  0xfd   : > { %1424 = vmatprep.subr.bf16.mxu1 %v1504_v1 }
 0x19f   : > { %v665_v38 = vpop.f32.mrf.mxu1 }
 0x1a0   : > { %v666_v40 = vadd.f32 %v1241_v37, %v665_v38 }
 0x1a1   : > { %v1362_v39 = vpop.f32.mrf.mxu1 }
 0x1a2   : > { %v672_v44 = vmax.f32 %v666_v40, 0.0 }
 0x1a3   : > { %v668_v41 = vpop.f32.mrf.mxu1 }
 0x1a4   : > { %v669_v42 = vadd.f32 %v1241_v37, %v668_v41 }
 0x1a5   : > { %v1363_v43 = vpop.f32.mrf.mxu1 }
 0x1a6   : > { %v673_v45 = vmax.f32 %v669_v42, 0.0 }
 0x1a8   : > { %v674_v46 = vpack.c.bf16 %v673_v45, %v672_v44 }
 0x1aa   : > { %1381 = vmatmul.mubr.bf16.vlgmr.msra.gmra.mxu0 %v674_v46 }
 0x1ab   : > { %1420 = vmatprep.mubr.msk.bf16.mxu0 %vm1505_vm0, %v1504_v1  ;;  %1405 = vmatpush3.bf16.msra.mxu0 %v1480_v50 }
 0x1ac   : > { %1406 = vmatprep.subr.bf16.mxu0 %v1504_v1 }
 0x1af   : > { %1407 = vmatpush3.bf16.msra.mxu0 %v1481_v51 }
 0x1b0   : > { %1408 = vmatprep.subr.bf16.mxu0 %v1504_v1 }
 0x1b3   : > { %1409 = vmatpush3.bf16.msra.mxu0 %v1482_v52 }
 0x1b4   : > { %1410 = vmatprep.subr.bf16.mxu0 %v1504_v1 }
 0x1b7   : > { %1411 = vmatpush3.bf16.msra.mxu0 %v1483_v53 }
 0x1b8   : > { %1412 = vmatprep.subr.bf16.mxu0 %v1504_v1 }
 0x1bb   : > { %1413 = vmatpush3.bf16.msra.mxu0 %v1484_v54 }
 0x1bc   : > { %1414 = vmatprep.subr.bf16.mxu0 %v1504_v1 }
 0x1bf   : > { %1415 = vmatpush3.bf16.msra.mxu0 %v1485_v2 }
 0x1c0   : > { %1416 = vmatprep.subr.bf16.mxu0 %v1504_v1 }
 0x1c3   : > { %1417 = vmatpush3.bf16.msra.mxu0 %v1486_v3 }
 0x1c4   : > { %1418 = vmatprep.subr.bf16.mxu0 %v1504_v1 }
 0x1c7   : > { %1419 = vmatpush3.bf16.msra.mxu0 %v1487_v4 }
 0x26a   : > { %v780_v56 = vpop.f32.mrf.mxu0 }
 0x26b   : > { %v781_v58 = vadd.f32 %v1250_v55, %v780_v56 }
 0x26c   : > { %v1382_v57 = vpop.f32.mrf.mxu0 }
 0x26d   : > { %v787_v62 = vmax.f32 %v781_v58, 0.0 }
 0x26e   : > { %v783_v59 = vpop.f32.mrf.mxu0 }
 0x26f   : > { %v784_v60 = vadd.f32 %v1250_v55, %v783_v59 }
 0x270   : > { %v1383_v61 = vpop.f32.mrf.mxu0 }
 0x271   : > { %v788_v63 = vmax.f32 %v784_v60, 0.0 }
 0x273   : > { %v789_v0 = vpack.c.bf16 %v788_v63, %v787_v62 }
 0x275   : > { %1401 = vmatmul.mubr.bf16.vlgmr.msra.gmra.mxu1 %v789_v0 }
 0x276   : > { %1440 = vmatprep.mubr.msk.bf16.mxu1 %vm1505_vm0, %v1504_v1  ;;  %1425 = vmatpush3.bf16.msra.mxu1 %v1488_v5 }
 0x277   : > { %1426 = vmatprep.subr.bf16.mxu1 %v1504_v1 }
 0x27a   : > { %1427 = vmatpush3.bf16.msra.mxu1 %v1489_v6 }
 0x27b   : > { %1428 = vmatprep.subr.bf16.mxu1 %v1504_v1 }
 0x27e   : > { %1429 = vmatpush3.bf16.msra.mxu1 %v1490_v7 }
 0x27f   : > { %1430 = vmatprep.subr.bf16.mxu1 %v1504_v1 }
 0x282   : > { %1431 = vmatpush3.bf16.msra.mxu1 %v1491_v8 }
 0x283   : > { %1432 = vmatprep.subr.bf16.mxu1 %v1504_v1 }
 0x286   : > { %1433 = vmatpush3.bf16.msra.mxu1 %v1492_v9 }
 0x287   : > { %1434 = vmatprep.subr.bf16.mxu1 %v1504_v1 }
 0x28a   : > { %1435 = vmatpush3.bf16.msra.mxu1 %v1493_v20 }
 0x28b   : > { %1436 = vmatprep.subr.bf16.mxu1 %v1504_v1 }
 0x28e   : > { %1437 = vmatpush3.bf16.msra.mxu1 %v1494_v21 }
 0x28f   : > { %1438 = vmatprep.subr.bf16.mxu1 %v1504_v1  ;;  %v1277_v1 = vld [vmem:[%s1816_s12] ss:$0 sm:$0xff] }
 0x292   : > { %1439 = vmatpush3.bf16.msra.mxu1 %v1495_v22 }
 0x335   : > { %v895_v11 = vpop.f32.mrf.mxu1 }
 0x336   : > { %v896_v12 = vadd.f32 %v1259_v10, %v895_v11 }
 0x337   : > { %v1402_v13 = vpop.f32.mrf.mxu1 }
 0x338   : > { %v902_v14 = vmax.f32 %v896_v12, 0.0 }
 0x339   : > { %v898_v15 = vpop.f32.mrf.mxu1 }
 0x33a   : > { %904 = vst [vmem:[%s483_s23] sm:$0xff] %v902_v14  ;;  %v899_v16 = vadd.f32 %v1259_v10, %v898_v15 }
 0x33b   : > { %v1403_v17 = vpop.f32.mrf.mxu1 }
 0x33c   : > { %v903_v18 = vmax.f32 %v899_v16, 0.0 }
 0x33e   : > { %905 = vst [vmem:[%s483_s23 + $0x8] sm:$0xff] %v903_v18  ;;  %v906_v19 = vpack.c.bf16 %v903_v18, %v902_v14 }
 0x340   : > { %1421 = vmatmul.mubr.bf16.vlgmr.msra.gmra.mxu0 %v906_v19 }
 0x400   : > { %v1012_v24 = vpop.f32.mrf.mxu0 }
 0x401   : > { %v1013_v26 = vadd.f32 %v1268_v23, %v1012_v24 }
 0x402   : > { %v1422_v25 = vpop.f32.mrf.mxu0 }
 0x403   : > { %v1019_v30 = vmax.f32 %v1013_v26, 0.0 }
 0x404   : > { %v1015_v27 = vpop.f32.mrf.mxu0 }
 0x405   : > { %v1016_v28 = vadd.f32 %v1268_v23, %v1015_v27 }
 0x406   : > { %v1423_v29 = vpop.f32.mrf.mxu0 }
 0x407   : > { %v1020_v31 = vmax.f32 %v1016_v28, 0.0 }
 0x409   : > { %v1021_v32 = vpack.c.bf16 %v1020_v31, %v1019_v30 }
 0x40b   : > { %1441 = vmatmul.mubr.bf16.vlgmr.msra.gmra.mxu1 %v1021_v32 }
 0x4cb   : > { %v1127_v33 = vpop.f32.mrf.mxu1 }
 0x4cc   : > { %v1128_v34 = vadd.f32 %v1277_v1, %v1127_v33 }
 0x4cd   : > { %v1442_v35 = vpop.f32.mrf.mxu1 }
 0x4ce   : > { %1134 = vst [vmem:[%s477_s22] sm:$0xff] %v1128_v34 }
 0x4cf   : > { %v1130_v36 = vpop.f32.mrf.mxu1 }
 0x4d0   : > { %v1131_v37 = vadd.f32 %v1277_v1, %v1130_v36 }
 0x4d1   : > { %v1443_v38 = vpop.f32.mrf.mxu1 }
 0x4d2   : > { %1135 = vst [vmem:[%s477_s22 + $0x8] sm:$0xff] %v1131_v37 }
 0x4d3 PF: > { %s25_s29 = sadd.s32 1, %s1502_s29  }
 0x4d4   : > { %p22_p4 = scmp.ge.s32.totalorder %s25_s29, 4  }
 0x4d6   :  { %24 = sbr.rel (!%p22_p4) target bundleno = 1 (0x1), region = 114 }

// kernel: lid_feed_forward.1
= control target key start
LH: loop header
LB: loop body
LE: loop exit
PB: predicated region body
PF: predicated region fallthrough
CT: control target
= control target key end

     0   :  { %s1581_s29 = smov 0   ;;  %s1804_s0 = inlined_call_operand.vmem [shape: f32[27,32], index: 0, kind: input, shape index: {}]   ;;  %s1805_s1 = inlined_call_operand.vmem [shape: bf16[32,128], index: 1, kind: input, shape index: {}]   ;;  %s1806_s2 = inlined_call_operand.vmem [shape: f32[1,128], index: 2, kind: input, shape index: {}]   ;;  %s1807_s3 = inlined_call_operand.vmem [shape: bf16[128,128], index: 3, kind: input, shape index: {}]   ;;  %s1808_s4 = inlined_call_operand.vmem [shape: f32[1,128], index: 4, kind: input, shape index: {}]   ;;  %s1809_s5 = inlined_call_operand.vmem [shape: bf16[128,128], index: 5, kind: input, shape index: {}]   ;;  %s1810_s6 = inlined_call_operand.vmem [shape: f32[1,128], index: 6, kind: input, shape index: {}]   ;;  %s1811_s7 = inlined_call_operand.vmem [shape: bf16[128,128], index: 7, kind: input, shape index: {}]   ;;  %s1812_s8 = inlined_call_operand.vmem [shape: f32[1,128], index: 8, kind: input, shape index: {}]   ;;  %s1813_s9 = inlined_call_operand.vmem [shape: bf16[128,128], index: 9, kind: input, shape index: {}]   ;;  %s1814_s10 = inlined_call_operand.vmem [shape: f32[1,128], index: 10, kind: input, shape index: {}]   ;;  %s1815_s11 = inlined_call_operand.vmem [shape: bf16[128,128], index: 11, kind: input, shape index: {}]   ;;  %s1816_s12 = inlined_call_operand.vmem [shape: f32[1,128], index: 12, kind: input, shape index: {}]   ;;  %s1817_s13 = inlined_call_operand.vmem [shape: f32[27,128], index: 13, kind: output, shape index: {0}]   ;;  %s1818_s14 = inlined_call_operand.vmem [shape: f32[27,128], index: 14, kind: output, shape index: {1}]  }
   0x1 LB: > { %s1226_s30 = sadd.s32 4294967295, %s1502_s29   ;;  %p1230_p0 = scmp.ge.s32.totalorder %s1502_s29, 1  ;;  %s1502_s29 = sphi %s1581_s29, %s25_s29  }
   0x2   : > { %p416_p1 = scmp.lt.s32.totalorder %s1502_s29, 3 }
   0x4   : > { %p417_p2 = pnand %p1230_p0, %p416_p1 }
   0x5   : > { %s1231_s19 = sshll.u32 (!%p417_p2), %s1226_s30, 1 }
   0x6   : > { %420 = sbr.rel (%p417_p2) target bundleno = 1235 (0x4d3), region = 72  ;;  %p468_p3 = scmp.lt.s32.totalorder (!%p417_p2), %s1231_s19, 3 }
   0xb   : > { %v1454_v0 = vld [vmem:[%s1805_s1 + $0x8] sm:$0xff]   ;;  %v1504_v1 = vmov 0.0   ;;  %v1455_v2 = vld [vmem:[%s1805_s1] sm:$0xff]   ;;  %vm1505_vm0 = vmmov 0   ;;  %v1456_v3 = vld [vmem:[%s1807_s3 + $0x38] sm:$0xff]   ;;  %s1820_s19 = smov (!%p468_p3, %s1231_s19), 3 }
   0xc   : > { %1336 = vmatprep.subr.bf16.mxu0 %v1504_v1  ;;  %1344 = vmatprep.subr.bf16.mxu1 %v1504_v1  ;;  %v1457_v4 = vld [vmem:[%s1807_s3 + $0x30] sm:$0xff]   ;;  %s1609_s24 = sshll.u32 %s1820_s19, 3  ;;  %v1458_v5 = vld [vmem:[%s1807_s3 + $0x28] sm:$0xff]   ;;  %vm512_vm1 = vcmask 261120   ;;  %v1459_v9 = vld [vmem:[%s1807_s3 + $0x20] sm:$0xff]  }
   0xd   : > { %1337 = vmatpush3.bf16.msra.mxu0 %v1454_v0  ;;  %1340 = vmatprep.mubr.msk.bf16.mxu0 %vm1505_vm0, %v1504_v1  ;;  %s471_s30 = scalar_lea.vmem %s1804_s0, %s1609_s24  ;;  %v1460_v10 = vld [vmem:[%s1807_s3 + $0x18] sm:$0xff]   ;;  %v1461_v11 = vld [vmem:[%s1807_s3 + $0x10] sm:$0xff]   ;;  %v1462_v12 = vld [vmem:[%s1807_s3 + $0x8] sm:$0xff]   ;;  %s483_s23 = scalar_lea.vmem %s1818_s14, %s1609_s24 }
   0xe   : > { %1338 = vmatprep.subr.bf16.mxu0 %v1504_v1  ;;  %1360 = vmatprep.mubr.msk.bf16.mxu1 %vm1505_vm0, %v1504_v1  ;;  %v486_v6 = vld [vmem:[%s471_s30] sm:$0xff]  ;;  %v487_v7 = vld [vmem:[%s471_s30 + $0x8] sm:$0xff]  ;;  %v1464_v14 = vld [vmem:[%s1809_s5 + $0x38] sm:$0xff]   ;;  %s477_s22 = scalar_lea.vmem %s1817_s13, %s1609_s24 }
   0xf   : > { %1345 = vmatpush3.bf16.msra.mxu1 %v1456_v3  ;;  %v488_v8 = vpack.c.bf16 %v487_v7, %v486_v6  ;;  %v1463_v13 = vld [vmem:[%s1807_s3] sm:$0xff]   ;;  %v1465_v15 = vld [vmem:[%s1809_s5 + $0x30] sm:$0xff]   ;;  %v1466_v16 = vld [vmem:[%s1809_s5 + $0x28] sm:$0xff]  }
  0x10   : > { %1346 = vmatprep.subr.bf16.mxu1 %v1504_v1  ;;  %v1467_v17 = vld [vmem:[%s1809_s5 + $0x20] sm:$0xff]   ;;  %v1468_v18 = vld [vmem:[%s1809_s5 + $0x18] sm:$0xff]   ;;  %v1469_v29 = vld [vmem:[%s1809_s5 + $0x10] sm:$0xff]  }
  0x11   : > { %1339 = vmatpush3.bf16.msra.mxu0 %v1455_v2  ;;  %v1237_v19 = vld [vmem:[%s1806_s2] ss:$0 sm:$0xff]  ;;  %v1470_v30 = vld [vmem:[%s1809_s5 + $0x8] sm:$0xff]   ;;  %v1472_v32 = vld [vmem:[%s1811_s7 + $0x38] sm:$0xff]  }
  0x12   : > { %1364 = vmatprep.subr.bf16.mxu0 %v1504_v1  ;;  %v1471_v31 = vld [vmem:[%s1809_s5] sm:$0xff]   ;;  %v1473_v33 = vld [vmem:[%s1811_s7 + $0x30] sm:$0xff]   ;;  %v1474_v34 = vld [vmem:[%s1811_s7 + $0x28] sm:$0xff]  }
  0x13   : > { %1347 = vmatpush3.bf16.msra.mxu1 %v1457_v4  ;;  %v1475_v35 = vld [vmem:[%s1811_s7 + $0x20] sm:$0xff]   ;;  %v1476_v36 = vld [vmem:[%s1811_s7 + $0x18] sm:$0xff]   ;;  %v1477_v47 = vld [vmem:[%s1811_s7 + $0x10] sm:$0xff]  }
  0x14   : > { %1348 = vmatprep.subr.bf16.mxu1 %v1504_v1  ;;  %1341 = vmatmul.mubr.msk.bf16.vlgmr.msra.gmra.mxu0 %vm512_vm1, %v488_v8  ;;  %v1241_v37 = vld [vmem:[%s1808_s4] ss:$0 sm:$0xff]  ;;  %v1478_v48 = vld [vmem:[%s1811_s7 + $0x8] sm:$0xff]   ;;  %v1480_v50 = vld [vmem:[%s1813_s9 + $0x38] sm:$0xff]  }
  0x15   : > { %1380 = vmatprep.mubr.msk.bf16.mxu0 %vm1505_vm0, %v1504_v1  ;;  %1365 = vmatpush3.bf16.msra.mxu0 %v1464_v14  ;;  %v1479_v49 = vld [vmem:[%s1811_s7] sm:$0xff]   ;;  %v1481_v51 = vld [vmem:[%s1813_s9 + $0x30] sm:$0xff]   ;;  %v1482_v52 = vld [vmem:[%s1813_s9 + $0x28] sm:$0xff]  }
  0x16   : > { %1366 = vmatprep.subr.bf16.mxu0 %v1504_v1  ;;  %v1483_v53 = vld [vmem:[%s1813_s9 + $0x20] sm:$0xff]   ;;  %v1484_v54 = vld [vmem:[%s1813_s9 + $0x18] sm:$0xff]   ;;  %v1485_v2 = vld [vmem:[%s1813_s9 + $0x10] sm:$0xff]  }
  0x17   : > { %1349 = vmatpush3.bf16.msra.mxu1 %v1458_v5  ;;  %v1250_v55 = vld [vmem:[%s1810_s6] ss:$0 sm:$0xff]  ;;  %v1486_v3 = vld [vmem:[%s1813_s9 + $0x8] sm:$0xff]   ;;  %v1488_v5 = vld [vmem:[%s1815_s11 + $0x38] sm:$0xff]  }
  0x18   : > { %1350 = vmatprep.subr.bf16.mxu1 %v1504_v1  ;;  %v1487_v4 = vld [vmem:[%s1813_s9] sm:$0xff]   ;;  %v1489_v6 = vld [vmem:[%s1815_s11 + $0x30] sm:$0xff]   ;;  %v1490_v7 = vld [vmem:[%s1815_s11 + $0x28] sm:$0xff]  }
  0x19   : > { %1367 = vmatpush3.bf16.msra.mxu0 %v1465_v15  ;;  %v1491_v8 = vld [vmem:[%s1815_s11 + $0x20] sm:$0xff]  }
  0x1a   : > { %1368 = vmatprep.subr.bf16.mxu0 %v1504_v1 }
  0x1b   : > { %1351 = vmatpush3.bf16.msra.mxu1 %v1459_v9  ;;  %v1492_v9 = vld [vmem:[%s1815_s11 + $0x18] sm:$0xff]  }
  0x1c   : > { %1352 = vmatprep.subr.bf16.mxu1 %v1504_v1 }
  0x1d   : > { %1369 = vmatpush3.bf16.msra.mxu0 %v1466_v16 }
  0x1e   : > { %1370 = vmatprep.subr.bf16.mxu0 %v1504_v1 }
  0x1f   : > { %1353 = vmatpush3.bf16.msra.mxu1 %v1460_v10  ;;  %v1259_v10 = vld [vmem:[%s1812_s8] ss:$0 sm:$0xff] }
  0x20   : > { %1354 = vmatprep.subr.bf16.mxu1 %v1504_v1 }
  0x21   : > { %1371 = vmatpush3.bf16.msra.mxu0 %v1467_v17 }
  0x22   : > { %1372 = vmatprep.subr.bf16.mxu0 %v1504_v1 }
  0x23   : > { %1355 = vmatpush3.bf16.msra.mxu1 %v1461_v11 }
  0x24   : > { %1356 = vmatprep.subr.bf16.mxu1 %v1504_v1 }
  0x25   : > { %1373 = vmatpush3.bf16.msra.mxu0 %v1468_v18 }
  0x26   : > { %1374 = vmatprep.subr.bf16.mxu0 %v1504_v1 }
  0x27   : > { %1357 = vmatpush3.bf16.msra.mxu1 %v1462_v12 }
  0x28   : > { %1358 = vmatprep.subr.bf16.mxu1 %v1504_v1 }
  0x29   : > { %1375 = vmatpush3.bf16.msra.mxu0 %v1469_v29 }
  0x2a   : > { %1376 = vmatprep.subr.bf16.mxu0 %v1504_v1 }
  0x2b   : > { %1359 = vmatpush3.bf16.msra.mxu1 %v1463_v13 }
  0x2c   : > { %1384 = vmatprep.subr.bf16.mxu1 %v1504_v1 }
  0x2d   : > { %1377 = vmatpush3.bf16.msra.mxu0 %v1470_v30 }
  0x2e   : > { %1378 = vmatprep.subr.bf16.mxu0 %v1504_v1 }
  0x31   : > { %1379 = vmatpush3.bf16.msra.mxu0 %v1471_v31 }
  0x32   : > { %1404 = vmatprep.subr.bf16.mxu0 %v1504_v1 }
  0xd4   : > { %v550_v20 = vpop.f32.mrf.mxu0 }
  0xd5   : > { %v551_v22 = vadd.f32 %v1237_v19, %v550_v20  ;;  %v1493_v20 = vld [vmem:[%s1815_s11 + $0x10] sm:$0xff]  }
  0xd6   : > { %v1342_v21 = vpop.f32.mrf.mxu0 }
  0xd7   : > { %v557_v26 = vmax.f32 %v551_v22, 0.0  ;;  %v1494_v21 = vld [vmem:[%s1815_s11 + $0x8] sm:$0xff]   ;;  %v1495_v22 = vld [vmem:[%s1815_s11] sm:$0xff]  }
  0xd8   : > { %v553_v23 = vpop.f32.mrf.mxu0 }
  0xd9   : > { %v554_v24 = vadd.f32 %v1237_v19, %v553_v23  ;;  %v1268_v23 = vld [vmem:[%s1814_s10] ss:$0 sm:$0xff] }
  0xda   : > { %v1343_v25 = vpop.f32.mrf.mxu0 }
  0xdb   : > { %v558_v27 = vmax.f32 %v554_v24, 0.0 }
  0xdd   : > { %v559_v28 = vpack.c.bf16 %v558_v27, %v557_v26 }
  0xdf   : > { %1361 = vmatmul.mubr.bf16.vlgmr.msra.gmra.mxu1 %v559_v28 }
  0xe0   : > { %1400 = vmatprep.mubr.msk.bf16.mxu1 %vm1505_vm0, %v1504_v1  ;;  %1385 = vmatpush3.bf16.msra.mxu1 %v1472_v32 }
  0xe1   : > { %1386 = vmatprep.subr.bf16.mxu1 %v1504_v1 }
  0xe4   : > { %1387 = vmatpush3.bf16.msra.mxu1 %v1473_v33 }
  0xe5   : > { %1388 = vmatprep.subr.bf16.mxu1 %v1504_v1 }
  0xe8   : > { %1389 = vmatpush3.bf16.msra.mxu1 %v1474_v34 }
  0xe9   : > { %1390 = vmatprep.subr.bf16.mxu1 %v1504_v1 }
  0xec   : > { %1391 = vmatpush3.bf16.msra.mxu1 %v1475_v35 }
  0xed   : > { %1392 = vmatprep.subr.bf16.mxu1 %v1504_v1 }
  0xf0   : > { %1393 = vmatpush3.bf16.msra.mxu1 %v1476_v36 }
  0xf1   : > { %1394 = vmatprep.subr.bf16.mxu1 %v1504_v1 }
  0xf4   : > { %1395 = vmatpush3.bf16.msra.mxu1 %v1477_v47 }
  0xf5   : > { %1396 = vmatprep.subr.bf16.mxu1 %v1504_v1 }
  0xf8   : > { %1397 = vmatpush3.bf16.msra.mxu1 %v1478_v48 }
  0xf9   : > { %1398 = vmatprep.subr.bf16.mxu1 %v1504_v1 }
  0xfc   : > { %1399 = vmatpush3.bf16.msra.mxu1 %v1479_v49 }
  0xfd   : > { %1424 = vmatprep.subr.bf16.mxu1 %v1504_v1 }
 0x19f   : > { %v665_v38 = vpop.f32.mrf.mxu1 }
 0x1a0   : > { %v666_v40 = vadd.f32 %v1241_v37, %v665_v38 }
 0x1a1   : > { %v1362_v39 = vpop.f32.mrf.mxu1 }
 0x1a2   : > { %v672_v44 = vmax.f32 %v666_v40, 0.0 }
 0x1a3   : > { %v668_v41 = vpop.f32.mrf.mxu1 }
 0x1a4   : > { %v669_v42 = vadd.f32 %v1241_v37, %v668_v41 }
 0x1a5   : > { %v1363_v43 = vpop.f32.mrf.mxu1 }
 0x1a6   : > { %v673_v45 = vmax.f32 %v669_v42, 0.0 }
 0x1a8   : > { %v674_v46 = vpack.c.bf16 %v673_v45, %v672_v44 }
 0x1aa   : > { %1381 = vmatmul.mubr.bf16.vlgmr.msra.gmra.mxu0 %v674_v46 }
 0x1ab   : > { %1420 = vmatprep.mubr.msk.bf16.mxu0 %vm1505_vm0, %v1504_v1  ;;  %1405 = vmatpush3.bf16.msra.mxu0 %v1480_v50 }
 0x1ac   : > { %1406 = vmatprep.subr.bf16.mxu0 %v1504_v1 }
 0x1af   : > { %1407 = vmatpush3.bf16.msra.mxu0 %v1481_v51 }
 0x1b0   : > { %1408 = vmatprep.subr.bf16.mxu0 %v1504_v1 }
 0x1b3   : > { %1409 = vmatpush3.bf16.msra.mxu0 %v1482_v52 }
 0x1b4   : > { %1410 = vmatprep.subr.bf16.mxu0 %v1504_v1 }
 0x1b7   : > { %1411 = vmatpush3.bf16.msra.mxu0 %v1483_v53 }
 0x1b8   : > { %1412 = vmatprep.subr.bf16.mxu0 %v1504_v1 }
 0x1bb   : > { %1413 = vmatpush3.bf16.msra.mxu0 %v1484_v54 }
 0x1bc   : > { %1414 = vmatprep.subr.bf16.mxu0 %v1504_v1 }
 0x1bf   : > { %1415 = vmatpush3.bf16.msra.mxu0 %v1485_v2 }
 0x1c0   : > { %1416 = vmatprep.subr.bf16.mxu0 %v1504_v1 }
 0x1c3   : > { %1417 = vmatpush3.bf16.msra.mxu0 %v1486_v3 }
 0x1c4   : > { %1418 = vmatprep.subr.bf16.mxu0 %v1504_v1 }
 0x1c7   : > { %1419 = vmatpush3.bf16.msra.mxu0 %v1487_v4 }
 0x26a   : > { %v780_v56 = vpop.f32.mrf.mxu0 }
 0x26b   : > { %v781_v58 = vadd.f32 %v1250_v55, %v780_v56 }
 0x26c   : > { %v1382_v57 = vpop.f32.mrf.mxu0 }
 0x26d   : > { %v787_v62 = vmax.f32 %v781_v58, 0.0 }
 0x26e   : > { %v783_v59 = vpop.f32.mrf.mxu0 }
 0x26f   : > { %v784_v60 = vadd.f32 %v1250_v55, %v783_v59 }
 0x270   : > { %v1383_v61 = vpop.f32.mrf.mxu0 }
 0x271   : > { %v788_v63 = vmax.f32 %v784_v60, 0.0 }
 0x273   : > { %v789_v0 = vpack.c.bf16 %v788_v63, %v787_v62 }
 0x275   : > { %1401 = vmatmul.mubr.bf16.vlgmr.msra.gmra.mxu1 %v789_v0 }
 0x276   : > { %1440 = vmatprep.mubr.msk.bf16.mxu1 %vm1505_vm0, %v1504_v1  ;;  %1425 = vmatpush3.bf16.msra.mxu1 %v1488_v5 }
 0x277   : > { %1426 = vmatprep.subr.bf16.mxu1 %v1504_v1 }
 0x27a   : > { %1427 = vmatpush3.bf16.msra.mxu1 %v1489_v6 }
 0x27b   : > { %1428 = vmatprep.subr.bf16.mxu1 %v1504_v1 }
 0x27e   : > { %1429 = vmatpush3.bf16.msra.mxu1 %v1490_v7 }
 0x27f   : > { %1430 = vmatprep.subr.bf16.mxu1 %v1504_v1 }
 0x282   : > { %1431 = vmatpush3.bf16.msra.mxu1 %v1491_v8 }
 0x283   : > { %1432 = vmatprep.subr.bf16.mxu1 %v1504_v1 }
 0x286   : > { %1433 = vmatpush3.bf16.msra.mxu1 %v1492_v9 }
 0x287   : > { %1434 = vmatprep.subr.bf16.mxu1 %v1504_v1 }
 0x28a   : > { %1435 = vmatpush3.bf16.msra.mxu1 %v1493_v20 }
 0x28b   : > { %1436 = vmatprep.subr.bf16.mxu1 %v1504_v1 }
 0x28e   : > { %1437 = vmatpush3.bf16.msra.mxu1 %v1494_v21 }
 0x28f   : > { %1438 = vmatprep.subr.bf16.mxu1 %v1504_v1  ;;  %v1277_v1 = vld [vmem:[%s1816_s12] ss:$0 sm:$0xff] }
 0x292   : > { %1439 = vmatpush3.bf16.msra.mxu1 %v1495_v22 }
 0x335   : > { %v895_v11 = vpop.f32.mrf.mxu1 }
 0x336   : > { %v896_v12 = vadd.f32 %v1259_v10, %v895_v11 }
 0x337   : > { %v1402_v13 = vpop.f32.mrf.mxu1 }
 0x338   : > { %v902_v14 = vmax.f32 %v896_v12, 0.0 }
 0x339   : > { %v898_v15 = vpop.f32.mrf.mxu1 }
 0x33a   : > { %904 = vst [vmem:[%s483_s23] sm:$0xff] %v902_v14  ;;  %v899_v16 = vadd.f32 %v1259_v10, %v898_v15 }
 0x33b   : > { %v1403_v17 = vpop.f32.mrf.mxu1 }
 0x33c   : > { %v903_v18 = vmax.f32 %v899_v16, 0.0 }
 0x33e   : > { %905 = vst [vmem:[%s483_s23 + $0x8] sm:$0xff] %v903_v18  ;;  %v906_v19 = vpack.c.bf16 %v903_v18, %v902_v14 }
 0x340   : > { %1421 = vmatmul.mubr.bf16.vlgmr.msra.gmra.mxu0 %v906_v19 }
 0x400   : > { %v1012_v24 = vpop.f32.mrf.mxu0 }
 0x401   : > { %v1013_v26 = vadd.f32 %v1268_v23, %v1012_v24 }
 0x402   : > { %v1422_v25 = vpop.f32.mrf.mxu0 }
 0x403   : > { %v1019_v30 = vmax.f32 %v1013_v26, 0.0 }
 0x404   : > { %v1015_v27 = vpop.f32.mrf.mxu0 }
 0x405   : > { %v1016_v28 = vadd.f32 %v1268_v23, %v1015_v27 }
 0x406   : > { %v1423_v29 = vpop.f32.mrf.mxu0 }
 0x407   : > { %v1020_v31 = vmax.f32 %v1016_v28, 0.0 }
 0x409   : > { %v1021_v32 = vpack.c.bf16 %v1020_v31, %v1019_v30 }
 0x40b   : > { %1441 = vmatmul.mubr.bf16.vlgmr.msra.gmra.mxu1 %v1021_v32 }
 0x4cb   : > { %v1127_v33 = vpop.f32.mrf.mxu1 }
 0x4cc   : > { %v1128_v34 = vadd.f32 %v1277_v1, %v1127_v33 }
 0x4cd   : > { %v1442_v35 = vpop.f32.mrf.mxu1 }
 0x4ce   : > { %1134 = vst [vmem:[%s477_s22] sm:$0xff] %v1128_v34 }
 0x4cf   : > { %v1130_v36 = vpop.f32.mrf.mxu1 }
 0x4d0   : > { %v1131_v37 = vadd.f32 %v1277_v1, %v1130_v36 }
 0x4d1   : > { %v1443_v38 = vpop.f32.mrf.mxu1 }
 0x4d2   : > { %1135 = vst [vmem:[%s477_s22 + $0x8] sm:$0xff] %v1131_v37 }
 0x4d3 PF: > { %s25_s29 = sadd.s32 1, %s1502_s29  }
 0x4d4   : > { %p22_p4 = scmp.ge.s32.totalorder %s25_s29, 4  }
 0x4d6   :  { %24 = sbr.rel (!%p22_p4) target bundleno = 1 (0x1), region = 114 }

</bundles_post_ra>
